<compile_context>
chip_gen: v5e
topology: v5e:2x2
jax: 0.10.0
libtpu: 0.0.40
codegen_flags: <defaults>
</compile_context>

<pallas_src>
import functools
import math

import jax
import jax.numpy as jnp
from jax.experimental import pallas as pl
from jax.experimental.pallas import tpu as pltpu


def layerscale_kernel(x_ref, g_ref, o_ref):
    # x_ref: (tm, D) tile of tokens
    # g_ref: (1, D)  per-channel scale (broadcast over rows by the VPU)
    # o_ref: (tm, D)
    o_ref[...] = (x_ref[...] * g_ref[...]).astype(o_ref.dtype)


@functools.partial(jax.jit, static_argnames=("tm", "vmem_budget_bytes"))
def layerscale_forward(x, gamma, *, tm=512, vmem_budget_bytes=24 * 1024 * 1024):
    """x: (..., D). gamma: (D,). Returns x * gamma with x's shape and dtype."""
    orig_shape = x.shape
    D = orig_shape[-1]
    N = math.prod(orig_shape[:-1]) if len(orig_shape) > 1 else 1

    itemsize = jnp.dtype(x.dtype).itemsize
    # Sublane quantum for the row tile (f32 -> 8, bf16 -> 16, int8/fp8 -> 32).
    q = {4: 8, 2: 16, 1: 32}.get(itemsize, 8)

    # Cap the row tile so the double-buffered x + out tiles (4 copies total)
    # fit in the VMEM budget, then round down to the sublane quantum.
    bytes_per_row = D * itemsize
    tm_cap = max(q, (vmem_budget_bytes // (4 * bytes_per_row)) // q * q)
    tm_eff = max(q, min(tm, tm_cap, pl.cdiv(N, q) * q))

    n_pad = pl.cdiv(N, tm_eff) * tm_eff

    x2d = x.reshape(N, D)
    if n_pad != N:
        x2d = jnp.pad(x2d, ((0, n_pad - N), (0, 0)))
    g2d = gamma.reshape(1, D).astype(x.dtype)

    grid = (n_pad // tm_eff,)

    bytes_accessed = (2 * n_pad * D + D) * itemsize
    cost = pl.CostEstimate(
        flops=n_pad * D, transcendentals=0, bytes_accessed=bytes_accessed
    )

    out2d = pl.pallas_call(
        layerscale_kernel,
        out_shape=jax.ShapeDtypeStruct((n_pad, D), x.dtype),
        grid=grid,
        in_specs=[
            pl.BlockSpec((tm_eff, D), lambda i: (i, 0)),  # x tile
            pl.BlockSpec((1, D), lambda i: (0, 0)),       # gamma (resident)
        ],
        out_specs=pl.BlockSpec((tm_eff, D), lambda i: (i, 0)),
        compiler_params=pltpu.CompilerParams(
            dimension_semantics=("parallel",),
        ),
        cost_estimate=cost,
    )(x2d, g2d)

    if n_pad != N:
        out2d = out2d[:N]
    return out2d.reshape(orig_shape)


def reference_layerscale(x, gamma):
    return x * gamma


if __name__ == "__main__":
    # Small shapes consistent with the module: tokens = B*S, feature dim D.
    # D is a multiple of 128 so the kernel is lane-dense.
    B, S, D = 2, 8, 256
    init_values = 1e-5

    key = jax.random.PRNGKey(0)
    kx, kg = jax.random.split(key, 2)

    x = jax.random.normal(kx, (B, S, D), dtype=jnp.float32)
    # gamma as the module initializes it (init_values * ones), perturbed a bit
    # so the test isn't trivially a constant scale.
    gamma = init_values * (1.0 + 0.1 * jax.random.normal(kg, (D,), dtype=jnp.float32))

    out = layerscale_forward(x, gamma)
    out = jax.block_until_ready(out)

    ref = reference_layerscale(x, gamma)
    assert out.shape == (B, S, D)
    assert out.dtype == x.dtype
    assert jnp.allclose(out, ref, atol=1e-6, rtol=1e-6), "mismatch vs reference"

    print("KERNEL_OK")
</pallas_src>

<mosaic_0001>
module attributes {stable_mosaic.version = 11 : i64} {
  func.func @layerscale_kernel(%arg0: i32, %arg1: memref<16x256xf32, #tpu.memory_space<vmem>>, %arg2: memref<1x256xf32, #tpu.memory_space<vmem>>, %arg3: memref<16x256xf32, #tpu.memory_space<vmem>>) attributes {dimension_semantics = [#tpu.dimension_semantics<parallel>], iteration_bounds = array<i64: 1>, scalar_prefetch = 0 : i64, scratch_operands = 0 : i64, tpu.core_type = #tpu.core_type<tc>, window_params = [{transform_indices = @transform_0, window_bounds = array<i64: 16, 256>}, {pipeline_mode = #tpu.pipeline_mode<synchronous>, transform_indices = @transform_1, window_bounds = array<i64: 1, 256>}, {transform_indices = @transform_2, window_bounds = array<i64: 16, 256>}]} {
    %c0 = arith.constant 0 : index
    %c0_0 = arith.constant 0 : index
    %0 = vector.load %arg1[%c0, %c0_0] : memref<16x256xf32, #tpu.memory_space<vmem>>, vector<16x256xf32>
    %c0_1 = arith.constant 0 : index
    %c0_2 = arith.constant 0 : index
    %1 = vector.load %arg2[%c0_1, %c0_2] : memref<1x256xf32, #tpu.memory_space<vmem>>, vector<1x256xf32>
    %2 = vector.broadcast %1 : vector<1x256xf32> to vector<16x256xf32>
    %3 = arith.mulf %0, %2 : vector<16x256xf32>
    %c0_3 = arith.constant 0 : index
    %c0_4 = arith.constant 0 : index
    %4 = vector.load %arg3[%c0_3, %c0_4] : memref<16x256xf32, #tpu.memory_space<vmem>>, vector<16x256xf32>
    tpu.vector_store %arg3[%c0_3, %c0_4], %3 {strides = array<i32>} : memref<16x256xf32, #tpu.memory_space<vmem>>, vector<16x256xf32>,
    return
  }
  func.func @transform_0(%arg0: i32) -> (i32, i32) {
    %c0_i32 = arith.constant 0 : i32
    %c0_i32_0 = arith.constant 0 : i32
    return %arg0, %c0_i32 : i32, i32
  }
  func.func @transform_1(%arg0: i32) -> (i32, i32) {
    %c0_i32 = arith.constant 0 : i32
    %c0_i32_0 = arith.constant 0 : i32
    %c0_i32_1 = arith.constant 0 : i32
    return %c0_i32, %c0_i32_0 : i32, i32
  }
  func.func @transform_2(%arg0: i32) -> (i32, i32) {
    %c0_i32 = arith.constant 0 : i32
    %c0_i32_0 = arith.constant 0 : i32
    return %arg0, %c0_i32 : i32, i32
  }
}

</mosaic_0001>

<bundles_post_ra>
// kernel: layerscale_forward.1
= control target key start
LH: loop header
LB: loop body
LE: loop exit
PB: predicated region body
PF: predicated region fallthrough
CT: control target
= control target key end

     0   :  { %7 = vsyncpa [#allocation3], 0  ;;  %s149_s0 = inlined_call_operand.hbm [shape: f32[16,256], index: 0, kind: input, shape index: {}]   ;;  %s150_s1 = inlined_call_operand.vmem [shape: f32[1,256], index: 1, kind: input, shape index: {}]   ;;  %s151_s2 = inlined_call_operand.hbm [shape: f32[16,256], index: 2, kind: output, shape index: {}]  }
   0x1   :  { %8 = vsyncpa [#allocation4], 0  ;;  %s13_s11 = sshll.u32 %s149_s0, 4  ;;  %s121_s12 = smov [#allocation2]   ;;  %s14_s11 = int_to_ptr.hbm [resolvable:$true] %s13_s11 }
   0x2   :  { %s15_s13 = sshll.u32 %s121_s12, 4  ;;  %s122_s14 = smov 256   ;;  %s16_s13 = int_to_ptr.vmem [resolvable:$true] %s15_s13 }
   0x3   :  { %s123_s15 = smov 16  }
   0x4   :  { %21 = dma.hbm_to_vmem [thread:$0]  %s14_s11, 512, %s16_s13, [#allocation3], %s122_s14, %s122_s14, %s123_s15  }
   0x5   :  { %117 = dma.done.wait [#allocation3], 512  }
   0x6   :  { %118 = vsyncadd [#allocation3], 4294966784  ;;  %v28_v0 = vld [vmem:[#allocation2] sm:$0xff]  ;;  %v29_v2 = vld [vmem:[#allocation2 + $0x8] sm:$0xff]  ;;  %s124_s0 = smov [#allocation5]   ;;  %s52_s21 = sshll.u32 %s151_s2, 4  ;;  %s53_s21 = int_to_ptr.hbm [resolvable:$true] %s52_s21 }
   0x7   :  { %v32_v1 = vld [vmem:[%s150_s1] sm:$0x3]  ;;  %v30_v5 = vld [vmem:[#allocation2 + $0x10] sm:$0xff]  ;;  %v31_v6 = vld [vmem:[#allocation2 + $0x18] sm:$0xff]  ;;  %s50_s18 = sshll.u32 %s124_s0, 4  ;;  %s51_s18 = int_to_ptr.vmem [resolvable:$true] %s50_s18 }
   0x8   :  { %v34_v3 = vperm.slane %v32_v1, 0  ;;  %v35_v4 = vperm.slane %v32_v1, 1 }
   0xa   :  { %v38_v7 = vmul.f32 %v34_v3, %v28_v0  ;;  %v39_v8 = vmul.f32 %v35_v4, %v29_v2  ;;  %v40_v9 = vmul.f32 %v34_v3, %v30_v5  ;;  %v41_v10 = vmul.f32 %v35_v4, %v31_v6 }
   0xc   :  { %42 = vst [vmem:[#allocation5] sm:$0xff] %v38_v7 }
   0xd   :  { %43 = vst [vmem:[#allocation5 + $0x8] sm:$0xff] %v39_v8 }
   0xe   :  { %44 = vst [vmem:[#allocation5 + $0x10] sm:$0xff] %v40_v9 }
   0xf   :  { %45 = vst [vmem:[#allocation5 + $0x18] sm:$0xff] %v41_v10 }
  0x10   :  { %58 = dma.vmem_to_hbm [thread:$0]  %s51_s18, 512, %s53_s21, [#allocation4], %s122_s14, %s122_s14, %s123_s15  }
  0x11   :  { %119 = dma.done.wait [#allocation4], 512  }
  0x12   :  { %120 = vsyncadd [#allocation4], 4294966784 }
  0x13   :  { %63 = vsyncpa [#allocation3], 1 }
  0x14   :  { %64 = vsyncpa [#allocation4], 1 }

</bundles_post_ra>
